<compile_context>
chip_gen: v7x
topology: tpu7x:2x2x1
jax: 0.10.0
libtpu: 0.0.40
codegen_flags: <defaults>
</compile_context>

<pallas_src>
import functools

import jax
import jax.numpy as jnp
from jax import lax
from jax.experimental import pallas as pl
from jax.experimental.pallas import tpu as pltpu


def _round_up(v, m):
    return (v + m - 1) // m * m


def _cdiv(a, b):
    return -(-a // b)


def _vmem_need_bytes(tb, tc, d, itemsize):
    tiles = 2 * (tb * d + d * tc) * itemsize        # double-buffered x + W
    small = 2 * (2 * tc * 4 + tb * 4)               # w_rs, cbias, labels
    scratch = 4 * tb * 4                            # xs / m / l / c
    interm = 3 * tb * tc * 4                        # raw / logits / p (f32)
    return tiles + small + scratch + interm


def _vmem_capacity_bytes():
    try:
        return int(pltpu.get_tpu_info().vmem_capacity_bytes)
    except Exception:
        return 64 << 20      # conservative (v7x per-TC VMEM)


def _choose_tiles(b, d, c, itemsize, vmem_budget):
    # Class tile: lane/MXU multiple of 128; 512 keeps the W stream well
    # double-buffered for production C.
    tc = min(512, _round_up(c, 128))
    # Batch tile: target ~512 rows (arithmetic intensity vs. the dominant
    # re-streamed W operand), split to minimize padding, keep >= 2 tiles for
    # large B so both v7x TensorCores get batch tiles on the "parallel" axis.
    target_tb = 512
    n_tiles = max(1, _cdiv(b, target_tb))
    if b >= 128 and n_tiles == 1:
        n_tiles = 2
    tb = _round_up(_cdiv(b, n_tiles), 8)
    # Shrink tb (then tc) until the working set fits the VMEM budget.
    while _vmem_need_bytes(tb, tc, d, itemsize) > vmem_budget and tb > 64:
        tb = max(64, _round_up(tb // 2, 8))
    while _vmem_need_bytes(tb, tc, d, itemsize) > vmem_budget and tc > 128:
        tc = max(128, tc // 2)
    return tb, tc


def sphere_loss_kernel(x_ref, w_ref, wrs_ref, cbias_ref, label_ref, out_ref,
                       xs_scr, m_scr, l_scr, c_scr,
                       *, scale, b_real, tb, tc, mask_classes):
    i = pl.program_id(0)          # batch tile index ("parallel")
    j = pl.program_id(1)          # class tile index (reduction, "arbitrary")
    nj = pl.num_programs(1)

    x = x_ref[...]                # (tb, D)  native dtype -> MXU
    labels = label_ref[...]       # (tb, 1)  int32

    # ---- per-batch-tile init (first class tile only) ----
    @pl.when(j == 0)
    def _():
        xf = x.astype(jnp.float32)
        xsq = jnp.sum(xf * xf, axis=1, keepdims=True)               # (tb, 1)
        # scale / clamp(|x|, 1e-12)  ==  scale * rsqrt(clamp(|x|^2, 1e-24))
        xs_scr[...] = scale * lax.rsqrt(jnp.maximum(xsq, 1e-24))
        m_scr[...] = jnp.full((tb, 1), -1e30, jnp.float32)
        l_scr[...] = jnp.zeros((tb, 1), jnp.float32)
        c_scr[...] = jnp.zeros((tb, 1), jnp.float32)

    # ---- raw MXU matmul; normalization + scale folded in post-matmul ----
    raw = jnp.dot(x, w_ref[...], preferred_element_type=jnp.float32)  # (tb, tc)
    logits = raw * xs_scr[...] * wrs_ref[...]                         # (tb, tc)
    if mask_classes:
        # Additive bias: 0 for valid classes, -1e30 for padded classes
        # (precomputed in the wrapper; skipped at trace time if no padding).
        logits = logits + cbias_ref[...]

    # ---- online log-sum-exp across class tiles ----
    m_old = m_scr[...]
    tile_max = jnp.max(logits, axis=1, keepdims=True)
    m_new = jnp.maximum(m_old, tile_max)
    alpha = jnp.exp(m_old - m_new)
    p = jnp.exp(logits - m_new)           # padded classes underflow to 0
    l_scr[...] = alpha * l_scr[...] + jnp.sum(p, axis=1, keepdims=True)
    m_scr[...] = m_new

    # ---- correct-class logit (single select; padded cols never match) ----
    col = j * tc + lax.broadcasted_iota(jnp.int32, (tb, tc), 1)
    c_scr[...] += jnp.sum(jnp.where(col == labels, logits, 0.0),
                          axis=1, keepdims=True)

    # ---- finalize on the last class tile ----
    @pl.when(j == nj - 1)
    def _():
        nll = m_scr[...] + jnp.log(l_scr[...]) - c_scr[...]          # (tb, 1)
        row = i * tb + lax.broadcasted_iota(jnp.int32, (tb, 1), 0)
        nll = jnp.where(row < b_real, nll, 0.0)                      # drop padded rows
        out_ref[0, 0] = jnp.sum(nll)                                 # SMEM scalar


def sphere_loss(x, W, label, scale=14.0, tb=None, tc=None):
    B, D = x.shape
    D2, C = W.shape
    assert D == D2
    itemsize = jnp.dtype(x.dtype).itemsize

    vmem_cap = _vmem_capacity_bytes()
    # ~60% of physical VMEM for the working set (more aggressive on the
    # 128 MiB v5e/v6e parts, tighter on v7x's 64 MiB).
    vmem_budget = min(int(vmem_cap * 0.6), 72 << 20)
    auto_tb, auto_tc = _choose_tiles(B, D, C, itemsize, vmem_budget)
    if tb is None:
        tb = auto_tb
    if tc is None:
        tc = auto_tc

    B_pad = _round_up(B, tb)
    C_pad = _round_up(C, tc)
    nb, nc = B_pad // tb, C_pad // tc
    mask_classes = (C_pad != C)

    x_p = x if B_pad == B else jnp.pad(x, ((0, B_pad - B), (0, 0)))
    W_p = W if C_pad == C else jnp.pad(W, ((0, 0), (0, C_pad - C)))
    lab = label.astype(jnp.int32)
    lab_p = lab if B_pad == B else jnp.pad(lab, (0, B_pad - B))
    lab2d = lab_p.reshape(B_pad, 1)

    # ---- hoisted per-column W stats (computed once, streamed per tile) ----
    wf = W_p.astype(jnp.float32)
    w_rs = lax.rsqrt(jnp.maximum(jnp.sum(wf * wf, axis=0, keepdims=True),
                                 1e-24))                              # (1, C_pad)
    cbias = jnp.where(jnp.arange(C_pad) < C, 0.0, -1e30
                      ).astype(jnp.float32).reshape(1, C_pad)         # (1, C_pad)

    kernel = functools.partial(sphere_loss_kernel, scale=float(scale),
                               b_real=B, tb=tb, tc=tc,
                               mask_classes=mask_classes)

    need = _vmem_need_bytes(tb, tc, D, itemsize)
    vmem_limit = int(min(max(need + (8 << 20), 32 << 20),
                         vmem_cap - (8 << 20)))

    cost = pl.CostEstimate(
        flops=2 * B_pad * D * C_pad,
        transcendentals=B_pad * C_pad,
        bytes_accessed=int(B_pad * D * itemsize            # x (once)
                           + nb * C_pad * D * itemsize     # W, re-streamed nb x
                           + nb * C_pad * 8                # w_rs + cbias per pass
                           + B_pad * 4 + nb * 4),          # labels + partial sums
    )

    partial_sums = pl.pallas_call(
        kernel,
        out_shape=jax.ShapeDtypeStruct((nb, 1), jnp.float32),
        grid_spec=pltpu.PrefetchScalarGridSpec(
            num_scalar_prefetch=0,
            grid=(nb, nc),
            in_specs=[
                pl.BlockSpec((tb, D), lambda i, j: (i, 0)),   # x
                pl.BlockSpec((D, tc), lambda i, j: (0, j)),   # W
                pl.BlockSpec((1, tc), lambda i, j: (0, j)),   # rsqrt(|w_col|^2)
                pl.BlockSpec((1, tc), lambda i, j: (0, j)),   # class-pad bias
                pl.BlockSpec((tb, 1), lambda i, j: (i, 0)),   # labels
            ],
            out_specs=pl.BlockSpec((1, 1), lambda i, j: (i, 0),
                                   memory_space=pltpu.MemorySpace.SMEM),
            scratch_shapes=[
                pltpu.VMEM((tb, 1), jnp.float32),   # scale * rsqrt(|x|^2)
                pltpu.VMEM((tb, 1), jnp.float32),   # running max
                pltpu.VMEM((tb, 1), jnp.float32),   # running sum-exp
                pltpu.VMEM((tb, 1), jnp.float32),   # correct-class logit
            ],
        ),
        compiler_params=pltpu.CompilerParams(
            dimension_semantics=("parallel", "arbitrary"),
            vmem_limit_bytes=vmem_limit),
        cost_estimate=cost,
    )(x_p, W_p, w_rs, cbias, lab2d)

    # Tiny final reduction (nb values) + mean in the wrapper.
    return jnp.sum(partial_sums) / jnp.float32(B)


def sphere_loss_ref(x, W, label, scale=14.0):
    # Pure-JAX reference mirroring the PyTorch forward.
    x = x.astype(jnp.float32)
    W = W.astype(jnp.float32)
    xn = x / jnp.maximum(jnp.linalg.norm(x, axis=1, keepdims=True), 1e-12)
    wn = W / jnp.maximum(jnp.linalg.norm(W, axis=0, keepdims=True), 1e-12)
    logits = scale * (xn @ wn)
    logp = jax.nn.log_softmax(logits, axis=1)
    return -jnp.mean(jnp.take_along_axis(logp, label[:, None], axis=1))


if __name__ == "__main__":
    in_feats, n_classes, batch = 32, 16, 8
    scale = 14.0

    key = jax.random.PRNGKey(0)
    kx, kw, kl = jax.random.split(key, 3)

    # Deterministic xavier_normal_-style init for W.
    xavier_std = (2.0 / (in_feats + n_classes)) ** 0.5
    W = xavier_std * jax.random.normal(kw, (in_feats, n_classes), dtype=jnp.float32)

    x = jax.random.normal(kx, (batch, in_feats), dtype=jnp.float32)
    label = jax.random.randint(kl, (batch,), 0, n_classes, dtype=jnp.int32)

    loss = sphere_loss(x, W, label, scale=scale)
    loss = jax.block_until_ready(loss)

    loss_ref = sphere_loss_ref(x, W, label, scale=scale)
    assert jnp.allclose(loss, loss_ref, atol=1e-5, rtol=1e-5), (loss, loss_ref)

    print("KERNEL_OK")
</pallas_src>

<mosaic_0001>
module attributes {stable_mosaic.version = 11 : i64} {
  func.func @sphere_loss_kernel(%arg0: i32, %arg1: i32, %arg2: memref<8x32xf32, #tpu.memory_space<vmem>>, %arg3: memref<32x128xf32, #tpu.memory_space<vmem>>, %arg4: memref<1x128xf32, #tpu.memory_space<vmem>>, %arg5: memref<1x128xf32, #tpu.memory_space<vmem>>, %arg6: memref<8x1xi32, #tpu.memory_space<vmem>>, %arg7: memref<1x1xf32, #tpu.memory_space<smem>>, %arg8: memref<8x1xf32, #tpu.memory_space<vmem>>, %arg9: memref<8x1xf32, #tpu.memory_space<vmem>>, %arg10: memref<8x1xf32, #tpu.memory_space<vmem>>, %arg11: memref<8x1xf32, #tpu.memory_space<vmem>>) attributes {dimension_semantics = [#tpu.dimension_semantics<parallel>, #tpu.dimension_semantics<arbitrary>], iteration_bounds = array<i64: 1, 1>, scalar_prefetch = 0 : i64, scratch_operands = 4 : i64, tpu.core_type = #tpu.core_type<tc>, window_params = [{transform_indices = @transform_0, window_bounds = array<i64: 8, 32>}, {transform_indices = @transform_1, window_bounds = array<i64: 32, 128>}, {transform_indices = @transform_2, window_bounds = array<i64: 1, 128>}, {transform_indices = @transform_3, window_bounds = array<i64: 1, 128>}, {transform_indices = @transform_4, window_bounds = array<i64: 8, 1>}, {transform_indices = @transform_5, window_bounds = array<i64: 1, 1>}]} {
    %c0 = arith.constant 0 : index
    %c0_0 = arith.constant 0 : index
    %0 = vector.load %arg2[%c0, %c0_0] : memref<8x32xf32, #tpu.memory_space<vmem>>, vector<8x32xf32>
    %c0_1 = arith.constant 0 : index
    %c0_2 = arith.constant 0 : index
    %1 = vector.load %arg6[%c0_1, %c0_2] : memref<8x1xi32, #tpu.memory_space<vmem>>, vector<8x1xi32>
    %c0_i32 = arith.constant 0 : i32
    %2 = arith.cmpi eq, %arg1, %c0_i32 : i32
    %3 = arith.extui %2 : i1 to i32
    %c0_i32_3 = arith.constant 0 : i32
    %4 = arith.cmpi ne, %3, %c0_i32_3 : i32
    scf.if %4 {
      %48 = arith.mulf %0, %0 : vector<8x32xf32>
      %cst_30 = arith.constant dense<0.000000e+00> : vector<8xf32>
      %49 = vector.multi_reduction <add>, %48, %cst_30 [1] : vector<8x32xf32> to vector<8xf32>
      %50 = vector.shape_cast %49 : vector<8xf32> to vector<8x1xf32>
      %cst_31 = arith.constant 1.000000e-24 : f32
      %51 = vector.broadcast %cst_31 : f32 to vector<8x1xf32>
      %52 = arith.maximumf %50, %51 : vector<8x1xf32>
      %53 = math.rsqrt %52 : vector<8x1xf32>
      %cst_32 = arith.constant 1.400000e+01 : f32
      %54 = vector.broadcast %cst_32 : f32 to vector<8x1xf32>
      %55 = arith.mulf %54, %53 : vector<8x1xf32>
      %c0_33 = arith.constant 0 : index
      %c0_34 = arith.constant 0 : index
      %56 = vector.load %arg8[%c0_33, %c0_34] : memref<8x1xf32, #tpu.memory_space<vmem>>, vector<8x1xf32>
      tpu.vector_store %arg8[%c0_33, %c0_34], %55 {strides = array<i32>} : memref<8x1xf32, #tpu.memory_space<vmem>>, vector<8x1xf32>,
      %cst_35 = arith.constant -1.000000e+30 : f32
      %57 = vector.broadcast %cst_35 : f32 to vector<8x1xf32>
      %c0_36 = arith.constant 0 : index
      %c0_37 = arith.constant 0 : index
      %58 = vector.load %arg9[%c0_36, %c0_37] : memref<8x1xf32, #tpu.memory_space<vmem>>, vector<8x1xf32>
      tpu.vector_store %arg9[%c0_36, %c0_37], %57 {strides = array<i32>} : memref<8x1xf32, #tpu.memory_space<vmem>>, vector<8x1xf32>,
      %cst_38 = arith.constant 0.000000e+00 : f32
      %59 = vector.broadcast %cst_38 : f32 to vector<8x1xf32>
      %c0_39 = arith.constant 0 : index
      %c0_40 = arith.constant 0 : index
      %60 = vector.load %arg10[%c0_39, %c0_40] : memref<8x1xf32, #tpu.memory_space<vmem>>, vector<8x1xf32>
      tpu.vector_store %arg10[%c0_39, %c0_40], %59 {strides = array<i32>} : memref<8x1xf32, #tpu.memory_space<vmem>>, vector<8x1xf32>,
      %cst_41 = arith.constant 0.000000e+00 : f32
      %61 = vector.broadcast %cst_41 : f32 to vector<8x1xf32>
      %c0_42 = arith.constant 0 : index
      %c0_43 = arith.constant 0 : index
      %62 = vector.load %arg11[%c0_42, %c0_43] : memref<8x1xf32, #tpu.memory_space<vmem>>, vector<8x1xf32>
      tpu.vector_store %arg11[%c0_42, %c0_43], %61 {strides = array<i32>} : memref<8x1xf32, #tpu.memory_space<vmem>>, vector<8x1xf32>,
    } else {
    }
    %c0_4 = arith.constant 0 : index
    %c0_5 = arith.constant 0 : index
    %5 = vector.load %arg3[%c0_4, %c0_5] : memref<32x128xf32, #tpu.memory_space<vmem>>, vector<32x128xf32>
    %cst = arith.constant dense<0.000000e+00> : vector<8x128xf32>
    %6 = tpu.matmul %0, %5, %cst {dimension_numbers = #tpu.dot_dimension_numbers<[1], [0], [0], [1], [0, 0, 1, 1], [], []>} : vector<8x32xf32>, vector<32x128xf32>, vector<8x128xf32> -> vector<8x128xf32>
    %c0_6 = arith.constant 0 : index
    %c0_7 = arith.constant 0 : index
    %7 = vector.load %arg8[%c0_6, %c0_7] : memref<8x1xf32, #tpu.memory_space<vmem>>, vector<8x1xf32>
    %8 = vector.broadcast %7 : vector<8x1xf32> to vector<8x128xf32>
    %9 = arith.mulf %6, %8 : vector<8x128xf32>
    %c0_8 = arith.constant 0 : index
    %c0_9 = arith.constant 0 : index
    %10 = vector.load %arg4[%c0_8, %c0_9] : memref<1x128xf32, #tpu.memory_space<vmem>>, vector<1x128xf32>
    %11 = vector.broadcast %10 : vector<1x128xf32> to vector<8x128xf32>
    %12 = arith.mulf %9, %11 : vector<8x128xf32>
    %c0_10 = arith.constant 0 : index
    %c0_11 = arith.constant 0 : index
    %13 = vector.load %arg5[%c0_10, %c0_11] : memref<1x128xf32, #tpu.memory_space<vmem>>, vector<1x128xf32>
    %14 = vector.broadcast %13 : vector<1x128xf32> to vector<8x128xf32>
    %15 = arith.addf %12, %14 : vector<8x128xf32>
    %c0_12 = arith.constant 0 : index
    %c0_13 = arith.constant 0 : index
    %16 = vector.load %arg9[%c0_12, %c0_13] : memref<8x1xf32, #tpu.memory_space<vmem>>, vector<8x1xf32>
    %cst_14 = arith.constant dense<0xFF800000> : vector<8xf32>
    %17 = vector.multi_reduction <maximumf>, %15, %cst_14 [1] : vector<8x128xf32> to vector<8xf32>
    %18 = vector.shape_cast %17 : vector<8xf32> to vector<8x1xf32>
    %19 = arith.maximumf %16, %18 : vector<8x1xf32>
    %20 = arith.subf %16, %19 : vector<8x1xf32>
    %21 = math.exp %20 : vector<8x1xf32>
    %22 = vector.broadcast %19 : vector<8x1xf32> to vector<8x128xf32>
    %23 = arith.subf %15, %22 : vector<8x128xf32>
    %24 = math.exp %23 : vector<8x128xf32>
    %c0_15 = arith.constant 0 : index
    %c0_16 = arith.constant 0 : index
    %25 = vector.load %arg10[%c0_15, %c0_16] : memref<8x1xf32, #tpu.memory_space<vmem>>, vector<8x1xf32>
    %26 = arith.mulf %21, %25 : vector<8x1xf32>
    %cst_17 = arith.constant dense<0.000000e+00> : vector<8xf32>
    %27 = vector.multi_reduction <add>, %24, %cst_17 [1] : vector<8x128xf32> to vector<8xf32>
    %28 = vector.shape_cast %27 : vector<8xf32> to vector<8x1xf32>
    %29 = arith.addf %26, %28 : vector<8x1xf32>
    %c0_18 = arith.constant 0 : index
    %c0_19 = arith.constant 0 : index
    %30 = vector.load %arg10[%c0_18, %c0_19] : memref<8x1xf32, #tpu.memory_space<vmem>>, vector<8x1xf32>
    tpu.vector_store %arg10[%c0_18, %c0_19], %29 {strides = array<i32>} : memref<8x1xf32, #tpu.memory_space<vmem>>, vector<8x1xf32>,
    %c0_20 = arith.constant 0 : index
    %c0_21 = arith.constant 0 : index
    %31 = vector.load %arg9[%c0_20, %c0_21] : memref<8x1xf32, #tpu.memory_space<vmem>>, vector<8x1xf32>
    tpu.vector_store %arg9[%c0_20, %c0_21], %19 {strides = array<i32>} : memref<8x1xf32, #tpu.memory_space<vmem>>, vector<8x1xf32>,
    %c128_i32 = arith.constant 128 : i32
    %32 = arith.muli %arg1, %c128_i32 : i32
    %33 = tpu.iota {dimensions = array<i32: 1>} : vector<8x128xi32>
    %34 = vector.broadcast %32 : i32 to vector<8x128xi32>
    %35 = arith.addi %34, %33 : vector<8x128xi32>
    %c0_22 = arith.constant 0 : index
    %c0_23 = arith.constant 0 : index
    %36 = vector.load %arg11[%c0_22, %c0_23] : memref<8x1xf32, #tpu.memory_space<vmem>>, vector<8x1xf32>
    %37 = vector.broadcast %1 : vector<8x1xi32> to vector<8x128xi32>
    %38 = arith.cmpi eq, %35, %37 : vector<8x128xi32>
    %cst_24 = arith.constant 0.000000e+00 : f32
    %39 = vector.broadcast %cst_24 : f32 to vector<8x128xf32>
    %40 = arith.select %38, %15, %39 : vector<8x128xi1>, vector<8x128xf32>
    %cst_25 = arith.constant dense<0.000000e+00> : vector<8xf32>
    %41 = vector.multi_reduction <add>, %40, %cst_25 [1] : vector<8x128xf32> to vector<8xf32>
    %42 = vector.shape_cast %41 : vector<8xf32> to vector<8x1xf32>
    %43 = arith.addf %36, %42 : vector<8x1xf32>
    %c0_26 = arith.constant 0 : index
    %c0_27 = arith.constant 0 : index
    %44 = vector.load %arg11[%c0_26, %c0_27] : memref<8x1xf32, #tpu.memory_space<vmem>>, vector<8x1xf32>
    tpu.vector_store %arg11[%c0_26, %c0_27], %43 {strides = array<i32>} : memref<8x1xf32, #tpu.memory_space<vmem>>, vector<8x1xf32>,
    %c0_i32_28 = arith.constant 0 : i32
    %45 = arith.cmpi eq, %arg1, %c0_i32_28 : i32
    %46 = arith.extui %45 : i1 to i32
    %c0_i32_29 = arith.constant 0 : i32
    %47 = arith.cmpi ne, %46, %c0_i32_29 : i32
    scf.if %47 {
      %c0_30 = arith.constant 0 : index
      %c0_31 = arith.constant 0 : index
      %48 = vector.load %arg9[%c0_30, %c0_31] : memref<8x1xf32, #tpu.memory_space<vmem>>, vector<8x1xf32>
      %c0_32 = arith.constant 0 : index
      %c0_33 = arith.constant 0 : index
      %49 = vector.load %arg10[%c0_32, %c0_33] : memref<8x1xf32, #tpu.memory_space<vmem>>, vector<8x1xf32>
      %50 = math.log %49 : vector<8x1xf32>
      %51 = arith.addf %48, %50 : vector<8x1xf32>
      %c0_34 = arith.constant 0 : index
      %c0_35 = arith.constant 0 : index
      %52 = vector.load %arg11[%c0_34, %c0_35] : memref<8x1xf32, #tpu.memory_space<vmem>>, vector<8x1xf32>
      %53 = arith.subf %51, %52 : vector<8x1xf32>
      %c8_i32 = arith.constant 8 : i32
      %54 = arith.muli %arg0, %c8_i32 : i32
      %55 = tpu.iota {dimensions = array<i32: 0>} : vector<8x1xi32>
      %56 = vector.broadcast %54 : i32 to vector<8x1xi32>
      %57 = arith.addi %56, %55 : vector<8x1xi32>
      %c8_i32_36 = arith.constant 8 : i32
      %58 = vector.broadcast %c8_i32_36 : i32 to vector<8x1xi32>
      %59 = arith.cmpi slt, %57, %58 : vector<8x1xi32>
      %cst_37 = arith.constant 0.000000e+00 : f32
      %60 = vector.broadcast %cst_37 : f32 to vector<8x1xf32>
      %61 = arith.select %59, %53, %60 : vector<8x1xi1>, vector<8x1xf32>
      %62 = vector.shape_cast %61 : vector<8x1xf32> to vector<1x8x1xf32>
      %cst_38 = arith.constant dense<0.000000e+00> : vector<1xf32>
      %63 = vector.multi_reduction <add>, %62, %cst_38 [1, 2] : vector<1x8x1xf32> to vector<1xf32>
      %64 = vector.shape_cast %63 : vector<1xf32> to vector<1x1x1xf32>
      %65 = vector.extract %64[0, 0, 0] : f32 from vector<1x1x1xf32>
      %c0_39 = arith.constant 0 : index
      %c0_40 = arith.constant 0 : index
      %66 = memref.load %arg7[%c0_39, %c0_40] : memref<1x1xf32, #tpu.memory_space<smem>>
      memref.store %65, %arg7[%c0_39, %c0_40] : memref<1x1xf32, #tpu.memory_space<smem>>
    } else {
    }
    return
  }
  func.func @transform_0(%arg0: i32, %arg1: i32) -> (i32, i32) {
    %c0_i32 = arith.constant 0 : i32
    %c0_i32_0 = arith.constant 0 : i32
    return %arg0, %c0_i32 : i32, i32
  }
  func.func @transform_1(%arg0: i32, %arg1: i32) -> (i32, i32) {
    %c0_i32 = arith.constant 0 : i32
    %c0_i32_0 = arith.constant 0 : i32
    return %c0_i32, %arg1 : i32, i32
  }
  func.func @transform_2(%arg0: i32, %arg1: i32) -> (i32, i32) {
    %c0_i32 = arith.constant 0 : i32
    %c0_i32_0 = arith.constant 0 : i32
    return %c0_i32, %arg1 : i32, i32
  }
  func.func @transform_3(%arg0: i32, %arg1: i32) -> (i32, i32) {
    %c0_i32 = arith.constant 0 : i32
    %c0_i32_0 = arith.constant 0 : i32
    return %c0_i32, %arg1 : i32, i32
  }
  func.func @transform_4(%arg0: i32, %arg1: i32) -> (i32, i32) {
    %c0_i32 = arith.constant 0 : i32
    %c0_i32_0 = arith.constant 0 : i32
    return %arg0, %c0_i32 : i32, i32
  }
  func.func @transform_5(%arg0: i32, %arg1: i32) -> (i32, i32) {
    %c0_i32 = arith.constant 0 : i32
    %c0_i32_0 = arith.constant 0 : i32
    return %arg0, %c0_i32 : i32, i32
  }
}

</mosaic_0001>

<bundles_post_ra>
// kernel: tpu_custom_call.1
= control target key start
LH: loop header
LB: loop body
LE: loop exit
PB: predicated region body
PF: predicated region fallthrough
CT: control target
= control target key end

     0   :  { %10 = vsyncpa [#allocation7], 0  ;;  %s401_s0 = inlined_call_operand.vmem [shape: f32[8,32], index: 0, kind: input, shape index: {}]   ;;  %s402_s1 = inlined_call_operand.hbm [shape: f32[32,128], index: 1, kind: input, shape index: {}]   ;;  %s403_s2 = inlined_call_operand.vmem [shape: f32[1,128], index: 2, kind: input, shape index: {}]   ;;  %s404_s3 = inlined_call_operand.vmem [shape: f32[1,128], index: 3, kind: input, shape index: {}]   ;;  %s405_s4 = inlined_call_operand.vmem [shape: s32[8,1], index: 4, kind: input, shape index: {}]   ;;  %s406_s5 = inlined_call_operand.hbm [shape: f32[1,1], index: 5, kind: output, shape index: {}]  }
   0x1   :  { %11 = vsyncpa [#allocation8], 0  ;;  %s318_s18 = smov [#allocation6]   ;;  %s282_s22 = scalar_lea.hbm %s402_s1, 512 }
   0x2   :  { %s19_s19 = sshll.u32 %s318_s18, 4  ;;  %p283_p0 = scmp.ne.s32.totalorder %s402_s1, %s282_s22  ;;  %s20_s19 = int_to_ptr.vmem [resolvable:$true] %s19_s19 }
   0x3   :  { %p286_p1 = scmp.lt.u32.totalorder %s282_s22, %s402_s1 }
   0x5   :  { %p288_p2 = pnand %p286_p1, %p283_p0 }
   0x7   :  { %291 = shalt.err (!%p288_p2)
}
   0x8   :  { %s292_s27 = scalar_lea.vmem %s20_s19, 512  ;;  %p297_p4 = scmp.lt.s32.totalorder %s20_s19, %s20_s19 }
   0x9   :  { %p293_p3 = scmp.ne.s32.totalorder %s20_s19, %s292_s27  ;;  %p298_p5 = scmp.lt.s32.totalorder %s292_s27, %s292_s27 }
   0xb   :  { %p299_p6 = por %p298_p5, %p297_p4 }
   0xd   :  { %p300_p7 = pnand %p299_p6, %p293_p3 }
   0xf   :  { %303 = shalt.err (!%p300_p7)
}
  0x10   :  { %s319_s28 = smov 128   ;;  %s320_s29 = smov 8  }
  0x11   :  { %25 = dma.hbm_to_vmem [thread:$0]  %s402_s1, 512, %s20_s19, [#allocation7], %s319_s28, %s319_s28, %s320_s29  }
  0x12   :  { %314 = dma.done.wait [#allocation7], 512  }
  0x13   :  { %315 = vsyncadd [#allocation7], 4294966784  ;;  %vm49_vm0 = vcmask 7168   ;;  %v321_v0 = vmov 0.0|0.0   ;;  %v322_v1 = vmov 0.0   ;;  %vm323_vm1 = vmmov 0  }
  0x14   :  { %255 = vmatprep.subr.bf16.mxu0 %v321_v0  ;;  %52 = vst.msk [vmem:[#allocation4] sm:$0xff] %vm49_vm0, %v322_v1  ;;  %53 = vst.msk [vmem:[#allocation5] sm:$0xff] %vm49_vm0, %v322_v1  ;;  %252 = vmatprep.mubr.msk.f32.mxu0 %vm323_vm1, %v322_v1  ;;  %v35_v2 = vld [vmem:[%s401_s0] sm:$0xff]  ;;  %vm42_vm2 = vcmask 261120   ;;  %v55_v4 = vld [vmem:[#allocation6 + $0x8] sm:$0xff]  ;;  %v324_v11 = vmov 0   ;;  %v179_v31 = vlaneseq }
  0x15   :  { %v54_v3 = vld [vmem:[#allocation6] sm:$0xff]  ;;  %v41_v5 = vmul.f32 %v35_v2, %v35_v2  ;;  %v56_v7 = vld [vmem:[#allocation6 + $0x10] sm:$0xff]  ;;  %v57_v8 = vld [vmem:[#allocation6 + $0x18] sm:$0xff]  ;;  %272 = vset.pattern.permute.xlu0 %v324_v11  ;;  %273 = vset.pattern.permute.xlu1 %v324_v11  ;;  %v325_v17 = vmov -1e+30   ;;  %s304_s13 = scalar_lea.hbm %s406_s5, 16 }
  0x16   :  { %v256_v6 = vpack.c.bf16 %v55_v4, %v54_v3  ;;  %v259_v10 = vpack.c.bf16 %v57_v8, %v56_v7  ;;  %51 = vst.msk [vmem:[#allocation3] sm:$0xff] %vm49_vm0, %v325_v17  ;;  %v237_v20 = vld [vmem:[%s403_s2] ss:$0 sm:$0xff]  ;;  %v180_v34 = vand.u32 127, %v179_v31  ;;  %p305_p8 = scmp.ne.s32.totalorder %s406_s5, %s304_s13  ;;  %p308_p9 = scmp.lt.u32.totalorder %s304_s13, %s406_s5 }
  0x17   :  { %v43_v9 = vsel %vm42_vm2, %v41_v5, 0.0  ;;  %v238_v23 = vld [vmem:[%s404_s3] ss:$0 sm:$0xff] }
  0x18   :  { %257 = vmatpush3.bf16.msra.mxu0 %v256_v6  ;;  %44 = vadd.xlane.f32.xlu0 %v43_v9  ;;  %v36_v30 = vld [vmem:[%s405_s4] sm:$0xff]  ;;  %p310_p10 = pnand %p308_p9, %p305_p8 }
  0x19   :  { %258 = vmatprep.subr.bf16.mxu0 %v321_v0 }
  0x1b   :  { %v183_v40 = vld [vmem:[#allocation5] sm:$0xff]  ;;  %v170_v44 = vld [vmem:[#allocation4] sm:$0xff] }
  0x1c   :  { %260 = vmatpush3.bf16.msra.mxu0 %v259_v10 }
  0x1d   :  { %v155_v26 = vld [vmem:[#allocation3] sm:$0xff] }
  0x1f   :  { %253 = vmatmul.mubr.msk.f32.vlgmr.msra.gmra.mrb[0].mxu0 %vm42_vm2, %v35_v2 }
  0xa5   :  { %v45_v12 = vpop.xlane.xlu0 %44 }
  0xa6   :  { %v46_v13 = vmax.f32 %v45_v12, 1e-24 }
  0xa8   :  { %274 = vrsqrt.f32 %v46_v13 }
  0xb2   :  { %v275_v14 = vpop.eup %274 }
  0xb3   :  { %v48_v15 = vmul.f32 14.0, %v275_v14 }
  0xb5   :  { %50 = vst.msk [vmem:[#allocation2] sm:$0xff] %vm49_vm0, %v48_v15 }
  0xbc   :  { %v132_v16 = vld [vmem:[#allocation2] sm:$0xff] }
  0xbd   :  { %135 = vperm.xlu0 %272, %v132_v16  }
  0xf2   :  { %v128_v18 = vpop.f32.mrb[0].mxu0 }
  0xf3   :  { %v254_v19 = vpop.f32.mrb[1].mxu0 }
 0x13c   :  { %v136_v21 = vpop.permute.xlu0 %135 }
 0x13d   :  { %v138_v22 = vmul.f32 %v136_v21, %v128_v18 }
 0x13f   :  { %v146_v24 = vmul.f32 %v237_v20, %v138_v22 }
 0x141   :  { %v154_v25 = vadd.f32 %v238_v23, %v146_v24 }
 0x143   :  { %156 = vmax.xlane.f32.xlu1 %v154_v25 }
 0x1d0   :  { %v157_v27 = vpop.xlane.xlu1 %156 }
 0x1d1   :  { %v158_v28 = vmax.f32 %v155_v26, %v157_v27 }
 0x1d3   :  { %v159_v29 = vsub.f32 %v155_v26, %v158_v28  ;;  %177 = vst.msk [vmem:[#allocation3] sm:$0xff] %vm49_vm0, %v158_v28  ;;  %164 = vperm.xlu1 %273, %v158_v28  }
 0x1d5   :  { %v160_v39 = vmul.f32 1.442695, %v159_v29 }
 0x1d7   :  { %185 = vperm.xlu1 %273, %v36_v30  }
 0x1da   :  { %v196_v51 = vld [vmem:[#allocation3] sm:$0xff] }
 0x252   :  { %v165_v32 = vpop.permute.xlu1 %164 }
 0x253   :  { %v167_v33 = vsub.f32 %v154_v25, %v165_v32 }
 0x255   :  { %v168_v35 = vmul.f32 1.442695, %v167_v33 }
 0x256   :  { %v186_v36 = vpop.permute.xlu1 %185 }
 0x257   :  { %276 = vpow2.f32 %v168_v35  ;;  %vm187_vm3 = vcmp.eq.s32.totalorder %v180_v34, %v186_v36 }
 0x258   :  { %v188_v37 = vsel %vm187_vm3, %v154_v25, 0.0  ;;  %278 = vpow2.f32 %v160_v39 }
 0x259   :  { %189 = vadd.xlane.f32.xlu0 %v188_v37 }
 0x261   :  { %v277_v38 = vpop.eup %276 }
 0x262   :  { %172 = vadd.xlane.f32.xlu1 %v277_v38  ;;  %v279_v43 = vpop.eup %278 }
 0x263   :  { %v171_v45 = vmul.f32 %v279_v43, %v170_v44 }
 0x2e6   :  { %v190_v41 = vpop.xlane.xlu0 %189 }
 0x2e7   :  { %v191_v42 = vadd.f32 %v190_v41, %v183_v40 }
 0x2e9   :  { %192 = vst.msk [vmem:[#allocation5] sm:$0xff] %vm49_vm0, %v191_v42 }
 0x2ef   :  { %v173_v46 = vpop.xlane.xlu1 %172 }
 0x2f0   :  { %v174_v47 = vadd.f32 %v173_v46, %v171_v45  ;;  %v201_v53 = vld [vmem:[#allocation5] sm:$0xff] }
 0x2f2   :  { %176 = vst.msk [vmem:[#allocation4] sm:$0xff] %vm49_vm0, %v174_v47 }
 0x2f9   :  { %v197_v48 = vld [vmem:[#allocation4] sm:$0xff] }
 0x2fa   :  { %280 = vlog2.f32 %v197_v48 }
 0x304   :  { %v281_v49 = vpop.eup %280 }
 0x305   :  { %v199_v50 = vmul.f32 0.6931472, %v281_v49 }
 0x307   :  { %v200_v52 = vadd.f32 %v199_v50, %v196_v51 }
 0x309   :  { %v202_v54 = vsub.f32 %v200_v52, %v201_v53 }
 0x30b   :  { %v210_v55 = vsel %vm49_vm0, %v202_v54, 0.0 }
 0x30c   :  { %211 = vadd.xlane.f32.xlu1 %v210_v55 }
 0x399   :  { %v212_v56 = vpop.xlane.xlu1 %211 }
 0x39a   :  { %v213_v57 = vrot.slane %v212_v56, 4 }
 0x39c   :  { %v214_v58 = vadd.f32 %v213_v57, %v212_v56 }
 0x39e   :  { %v215_v59 = vrot.slane %v214_v58, 2 }
 0x3a0   :  { %v216_v60 = vadd.f32 %v215_v59, %v214_v58 }
 0x3a2   :  { %v217_v61 = vrot.slane %v216_v60, 1 }
 0x3a4   :  { %v218_v62 = vadd.f32 %v217_v61, %v216_v60 }
 0x3a6   :  { %261 = vpush %v218_v62 }
 0x3d7   :  { %s262_s2 = spop %261 }
 0x3d8   :  { %221 = sst [smem:[#allocation9]] %s262_s2 }
 0x3d9   :  { %313 = shalt.err (!%p310_p10)
}
 0x3da   :  { %s326_s18 = smov [#allocation9]  }
 0x3db   :  { %229 = dma.smem_to_hbm %s326_s18, 16, %s406_s5, [#allocation8]  }
 0x3dc   :  { %316 = dma.done.wait [#allocation8], 16  }
 0x3dd   :  { %317 = vsyncadd [#allocation8], 4294967280 }
 0x3de   :  { %233 = sfence }
 0x3df   :  { %234 = vsyncpa [#allocation7], 1 }
 0x3e0   :  { %235 = vsyncpa [#allocation8], 1 }

</bundles_post_ra>
